<compile_context>
chip_gen: v6e
topology: v6e:2x2x1
jax: 0.10.0
libtpu: 0.0.40
codegen_flags: <defaults>
</compile_context>

<pallas_src>
import functools

import jax
import jax.numpy as jnp
import numpy as np
from jax.experimental import pallas as pl
from jax.experimental.pallas import tpu as pltpu


def _round_up(x, m):
    return (x + m - 1) // m * m


def _snn_chunk_kernel(drive_ref, w_ref, params_ref, out_ref,
                      syn_ref, mem_ref, spk_ref, stage_ref, *, t_chunk, unroll):
    """Runs `t_chunk` consecutive time steps of the recurrent LIF network.

    drive_ref : (t_chunk, Bp, Np) f32   external drive, pre-scaled by dt^2
    w_ref     : (Np, Np)          bf16  recurrent weights, pre-scaled by dt^2
    params_ref: (8, Np)           f32   row0 = 1-dt/tau_syn, row1 = 1-dt/tau_mem,
                                        row2 = threshold (+inf on padded neurons)
    out_ref   : (t_chunk*Bp, Np)  bf16  spikes (time-major rows, batch within)
    syn/mem/spk_ref : (Bp, Np)    f32   persistent state across grid steps
    stage_ref : (t_chunk*Bp, Np)  f32   per-chunk spike staging buffer

    Grid axis 0 = time chunks (sequential recurrence -> "arbitrary").
    """
    @pl.when(pl.program_id(0) == 0)
    def _():
        syn_ref[...] = jnp.zeros_like(syn_ref)
        mem_ref[...] = jnp.zeros_like(mem_ref)
        spk_ref[...] = jnp.zeros_like(spk_ref)

    bp, np_ = syn_ref.shape
    # Hoist parameter broadcasts out of the time loop (no CSE otherwise).
    a_syn = jnp.broadcast_to(params_ref[0:1, :], (bp, np_))   # 1 - dt/tau_syn
    a_mem = jnp.broadcast_to(params_ref[1:2, :], (bp, np_))   # 1 - dt/tau_mem
    thr = jnp.broadcast_to(params_ref[2:3, :], (bp, np_))     # threshold (+inf pads)
    w_fb = w_ref[...]                                         # bf16, dt^2 pre-folded

    def body(tt, carry):
        # State lives entirely in vregs for the whole chunk.
        syn, mem, spk_bf = carry
        # Recurrent feedback: the single MXU matmul on the serial critical path.
        rec = jnp.dot(spk_bf, w_fb, preferred_element_type=jnp.float32)
        syn = syn * a_syn + (drive_ref[tt] + rec)   # syn is syn*dt (dt^2 folded)
        mem = mem * a_mem + syn
        fired = mem >= thr
        spk_f32 = fired.astype(jnp.float32)
        mem = jnp.where(fired, 0.0, mem)
        # Tile-aligned (multiple-of-8 sublane offset) store into the f32 stage.
        row = pl.multiple_of(tt * bp, bp)
        stage_ref[pl.ds(row, bp), :] = spk_f32
        return syn, mem, spk_f32.astype(jnp.bfloat16)

    carry0 = (syn_ref[...], mem_ref[...], spk_ref[...].astype(jnp.bfloat16))
    syn, mem, spk_bf = jax.lax.fori_loop(0, t_chunk, body, carry0, unroll=unroll)

    # Write state back to VMEM scratch once per chunk.
    syn_ref[...] = syn
    mem_ref[...] = mem
    spk_ref[...] = spk_bf.astype(jnp.float32)
    # Single dense bf16 writeback of the whole chunk's spikes.
    out_ref[...] = stage_ref[...].astype(jnp.bfloat16)


def _precompute_operands(input_signal, weights, tau_mem, tau_syn, threshold,
                         input_size, dt, t_chunk):
    """Host-side (XLA) precompute shared by the kernel wrapper and the reference."""
    f32 = jnp.float32
    T, B, N = input_signal.shape
    I = input_size
    dt = float(dt)
    dt2 = dt * dt

    Np = _round_up(N, 128)          # lane-dense vregs / MXU tiles
    Bp = _round_up(B, 8)            # f32 sublane minimum
    Tp = _round_up(T, t_chunk)

    x = input_signal.astype(f32)
    w = weights.astype(f32)

    # Augmented input->drive matrix: W[:I, :] plus identity for the direct
    # external current on non-input columns.  Producing the drive directly in
    # lane-padded (Np) space avoids a separate pad materialization.
    w_aug = jnp.zeros((N, Np), f32)
    w_aug = w_aug.at[:I, :N].set(w[:I, :])
    w_aug = w_aug.at[I:, I:N].set(jnp.eye(N - I, dtype=f32))

    # External drive, hoisted off the serial recurrence, pre-scaled by dt^2
    # (the in-kernel state is syn*dt).
    x_p = jnp.zeros((Tp, Bp, N), f32).at[:T, :B, :].set(x)
    drive_p = jnp.einsum("tbn,nm->tbm", x_p, w_aug,
                         precision=jax.lax.Precision.HIGHEST) * dt2

    # Recurrent feedback weights (spikes -> non-input columns), dt^2 folded in,
    # bf16 for native MXU rate.  Padded rows/cols stay exactly zero.
    ni = (jnp.arange(N) >= I).astype(f32)
    w_fb_p = jnp.zeros((Np, Np), f32).at[:N, :N].set(w * ni[None, :] * dt2)
    w_fb_p = w_fb_p.astype(jnp.bfloat16)

    # Per-neuron parameters packed into one (8, Np) operand.
    tau_s = jnp.ones((Np,), f32).at[:N].set(tau_syn.astype(f32))
    tau_m = jnp.ones((Np,), f32).at[:N].set(tau_mem.astype(f32))
    thr_p = jnp.full((Np,), jnp.inf, f32).at[:N].set(threshold.astype(f32))
    params = jnp.zeros((8, Np), f32)
    params = params.at[0].set(1.0 - dt / tau_s)
    params = params.at[1].set(1.0 - dt / tau_m)
    params = params.at[2].set(thr_p)

    return drive_p, w_fb_p, params, (T, B, N, I, Tp, Bp, Np)


def evolvable_snn_forward(input_signal, weights, tau_mem, tau_syn, threshold,
                          input_size, dt, *, t_chunk=8, unroll=8):
    """Pallas implementation of EvolvableSNN.forward -> spikes (T, B, N) bf16."""
    T = input_signal.shape[0]
    t_chunk = max(1, min(t_chunk, _round_up(T, 1)))
    drive_p, w_fb_p, params, dims = _precompute_operands(
        input_signal, weights, tau_mem, tau_syn, threshold, input_size, dt,
        t_chunk)
    T, B, N, I, Tp, Bp, Np = dims

    grid_spec = pltpu.PrefetchScalarGridSpec(
        num_scalar_prefetch=0,
        grid=(Tp // t_chunk,),
        in_specs=[
            pl.BlockSpec((t_chunk, Bp, Np), lambda g: (g, 0, 0)),   # drive chunk
            pl.BlockSpec((Np, Np), lambda g: (0, 0)),               # W_fb * dt^2 (bf16)
            pl.BlockSpec((8, Np), lambda g: (0, 0)),                # packed params
        ],
        # Sublane-dense bf16 output block: t_chunk*Bp rows = full bf16 tiles.
        out_specs=pl.BlockSpec((t_chunk * Bp, Np), lambda g: (g, 0)),
        scratch_shapes=[
            pltpu.VMEM((Bp, Np), jnp.float32),            # synaptic current * dt
            pltpu.VMEM((Bp, Np), jnp.float32),            # membrane potential
            pltpu.VMEM((Bp, Np), jnp.float32),            # previous-step spikes
            pltpu.VMEM((t_chunk * Bp, Np), jnp.float32),  # per-chunk spike stage
        ],
    )
    out2d = pl.pallas_call(
        functools.partial(_snn_chunk_kernel, t_chunk=t_chunk,
                          unroll=min(unroll, t_chunk)),
        out_shape=jax.ShapeDtypeStruct((Tp * Bp, Np), jnp.bfloat16),
        grid_spec=grid_spec,
        compiler_params=pltpu.CompilerParams(
            dimension_semantics=("arbitrary",)),   # time recurrence is sequential
    )(drive_p, w_fb_p, params)
    # Contiguous (time-major, batch-minor) reshape back to (T, B, N).
    return out2d.reshape(Tp, Bp, Np)[:T, :B, :N]


def snn_reference(input_signal, weights, tau_mem, tau_syn, threshold,
                  input_size, dt, *, t_chunk=8):
    """Pure-JAX reference with identical numerics (scan over time)."""
    f32 = jnp.float32
    drive_p, w_fb_p, params, dims = _precompute_operands(
        input_signal, weights, tau_mem, tau_syn, threshold, input_size, dt,
        t_chunk)
    T, B, N, I, Tp, Bp, Np = dims

    drive = drive_p[:T, :B, :N]
    w_fb = w_fb_p[:N, :N]
    a_syn = params[0, :N]
    a_mem = params[1, :N]
    thr = params[2, :N]

    def step(carry, d_t):
        syn, mem, spk = carry
        syn = syn * a_syn[None, :] + (
            d_t + jnp.dot(spk, w_fb, preferred_element_type=f32))
        mem = mem * a_mem[None, :] + syn
        fired = mem >= thr[None, :]
        mem = jnp.where(fired, 0.0, mem)
        return (syn, mem, fired.astype(jnp.bfloat16)), fired.astype(f32)

    init = (jnp.zeros((B, N), f32), jnp.zeros((B, N), f32),
            jnp.zeros((B, N), jnp.bfloat16))
    _, spikes = jax.lax.scan(step, init, drive)
    return spikes


def update_activity(spikes):
    """Glue mirroring EvolvableSNN.update_activity (module side-effect state)."""
    s = spikes.astype(jnp.float32)
    per_t = s.sum(axis=1)                  # batch-summed spikes, (T, N)
    neuron_activity = per_t.sum(axis=0)    # (N,)
    synapse_activity = per_t.T @ per_t     # sum_t outer(s_t, s_t), (N, N)
    return neuron_activity, synapse_activity


if __name__ == "__main__":
    # Small deterministic problem: num_neurons=64, input=8, output=8, T=8, B=2.
    T, B, N, I, O = 8, 2, 64, 8, 8
    dt = 0.001
    key = jax.random.PRNGKey(0)
    k_mask, k_w, k_x = jax.random.split(key, 3)

    # initialize_weights(connection_prob=0.1): randn * 0.1 * bernoulli(0.1)
    conn_mask = (jax.random.uniform(k_mask, (N, N)) < 0.1).astype(jnp.float32)
    weights = jax.random.normal(k_w, (N, N), dtype=jnp.float32) * 0.1 * conn_mask
    tau_mem = jnp.full((N,), 0.02, jnp.float32)
    tau_syn = jnp.full((N,), 0.005, jnp.float32)
    threshold = jnp.full((N,), 1.0, jnp.float32)

    # External drive on the input columns (scaled so some neurons spike).
    ext = jax.random.uniform(k_x, (T, B, I), dtype=jnp.float32) * 2e6
    input_signal = jnp.zeros((T, B, N), jnp.float32).at[:, :, :I].set(ext)

    spikes = evolvable_snn_forward(input_signal, weights, tau_mem, tau_syn,
                                   threshold, I, dt, t_chunk=8)
    spikes = jax.block_until_ready(spikes)
    assert spikes.shape == (T, B, N)

    ref = jax.block_until_ready(
        snn_reference(input_signal, weights, tau_mem, tau_syn, threshold, I, dt,
                      t_chunk=8))
    assert np.allclose(np.asarray(spikes.astype(jnp.float32)),
                       np.asarray(ref)), "mismatch vs reference"

    neuron_activity, synapse_activity = update_activity(spikes)
    jax.block_until_ready((neuron_activity, synapse_activity))

    print("KERNEL_OK")
</pallas_src>

<mosaic_0001>
module attributes {stable_mosaic.version = 11 : i64} {
  func.func @_snn_chunk_kernel(%arg0: i32, %arg1: memref<8x8x128xf32, #tpu.memory_space<vmem>>, %arg2: memref<128x128xbf16, #tpu.memory_space<vmem>>, %arg3: memref<8x128xf32, #tpu.memory_space<vmem>>, %arg4: memref<64x128xbf16, #tpu.memory_space<vmem>>, %arg5: memref<8x128xf32, #tpu.memory_space<vmem>>, %arg6: memref<8x128xf32, #tpu.memory_space<vmem>>, %arg7: memref<8x128xf32, #tpu.memory_space<vmem>>, %arg8: memref<64x128xf32, #tpu.memory_space<vmem>>) attributes {dimension_semantics = [#tpu.dimension_semantics<arbitrary>], iteration_bounds = array<i64: 1>, scalar_prefetch = 0 : i64, scratch_operands = 4 : i64, tpu.core_type = #tpu.core_type<tc>, window_params = [{transform_indices = @transform_0, window_bounds = array<i64: 8, 8, 128>}, {pipeline_mode = #tpu.pipeline_mode<synchronous>, transform_indices = @transform_1, window_bounds = array<i64: 128, 128>}, {pipeline_mode = #tpu.pipeline_mode<synchronous>, transform_indices = @transform_2, window_bounds = array<i64: 8, 128>}, {transform_indices = @transform_3, window_bounds = array<i64: 64, 128>}]} {
    %c0_i32 = arith.constant 0 : i32
    %0 = arith.cmpi eq, %arg0, %c0_i32 : i32
    %1 = arith.extui %0 : i1 to i32
    %c0_i32_0 = arith.constant 0 : i32
    %2 = arith.cmpi ne, %1, %c0_i32_0 : i32
    scf.if %2 {
      %cst_70 = arith.constant 0.000000e+00 : f32
      %176 = vector.broadcast %cst_70 : f32 to vector<8x128xf32>
      %c0_71 = arith.constant 0 : index
      %c0_72 = arith.constant 0 : index
      %177 = vector.load %arg5[%c0_71, %c0_72] : memref<8x128xf32, #tpu.memory_space<vmem>>, vector<8x128xf32>
      tpu.vector_store %arg5[%c0_71, %c0_72], %176 {strides = array<i32>} : memref<8x128xf32, #tpu.memory_space<vmem>>, vector<8x128xf32>,
      %cst_73 = arith.constant 0.000000e+00 : f32
      %178 = vector.broadcast %cst_73 : f32 to vector<8x128xf32>
      %c0_74 = arith.constant 0 : index
      %c0_75 = arith.constant 0 : index
      %179 = vector.load %arg6[%c0_74, %c0_75] : memref<8x128xf32, #tpu.memory_space<vmem>>, vector<8x128xf32>
      tpu.vector_store %arg6[%c0_74, %c0_75], %178 {strides = array<i32>} : memref<8x128xf32, #tpu.memory_space<vmem>>, vector<8x128xf32>,
      %cst_76 = arith.constant 0.000000e+00 : f32
      %180 = vector.broadcast %cst_76 : f32 to vector<8x128xf32>
      %c0_77 = arith.constant 0 : index
      %c0_78 = arith.constant 0 : index
      %181 = vector.load %arg7[%c0_77, %c0_78] : memref<8x128xf32, #tpu.memory_space<vmem>>, vector<8x128xf32>
      tpu.vector_store %arg7[%c0_77, %c0_78], %180 {strides = array<i32>} : memref<8x128xf32, #tpu.memory_space<vmem>>, vector<8x128xf32>,
    } else {
    }
    %c0 = arith.constant 0 : index
    %c0_1 = arith.constant 0 : index
    %3 = vector.load %arg3[%c0, %c0_1] : memref<8x128xf32, #tpu.memory_space<vmem>>, vector<1x128xf32>
    %4 = vector.shape_cast %3 : vector<1x128xf32> to vector<1x128xf32>
    %5 = vector.broadcast %4 : vector<1x128xf32> to vector<8x128xf32>
    %c1 = arith.constant 1 : index
    %c0_2 = arith.constant 0 : index
    %6 = vector.load %arg3[%c1, %c0_2] : memref<8x128xf32, #tpu.memory_space<vmem>>, vector<1x128xf32>
    %7 = vector.shape_cast %6 : vector<1x128xf32> to vector<1x128xf32>
    %8 = vector.broadcast %7 : vector<1x128xf32> to vector<8x128xf32>
    %c2 = arith.constant 2 : index
    %c0_3 = arith.constant 0 : index
    %9 = vector.load %arg3[%c2, %c0_3] : memref<8x128xf32, #tpu.memory_space<vmem>>, vector<1x128xf32>
    %10 = vector.shape_cast %9 : vector<1x128xf32> to vector<1x128xf32>
    %11 = vector.broadcast %10 : vector<1x128xf32> to vector<8x128xf32>
    %c0_4 = arith.constant 0 : index
    %c0_5 = arith.constant 0 : index
    %12 = vector.load %arg2[%c0_4, %c0_5] : memref<128x128xbf16, #tpu.memory_space<vmem>>, vector<128x128xbf16>
    %c0_6 = arith.constant 0 : index
    %c0_7 = arith.constant 0 : index
    %13 = vector.load %arg5[%c0_6, %c0_7] : memref<8x128xf32, #tpu.memory_space<vmem>>, vector<8x128xf32>
    %c0_8 = arith.constant 0 : index
    %c0_9 = arith.constant 0 : index
    %14 = vector.load %arg6[%c0_8, %c0_9] : memref<8x128xf32, #tpu.memory_space<vmem>>, vector<8x128xf32>
    %c0_10 = arith.constant 0 : index
    %c0_11 = arith.constant 0 : index
    %15 = vector.load %arg7[%c0_10, %c0_11] : memref<8x128xf32, #tpu.memory_space<vmem>>, vector<8x128xf32>
    %16 = arith.truncf %15 : vector<8x128xf32> to vector<8x128xbf16>
    %c0_i32_12 = arith.constant 0 : i32
    %cst = arith.constant dense<0.000000e+00> : vector<8x128xf32>
    %17 = tpu.matmul %16, %12, %cst {dimension_numbers = #tpu.dot_dimension_numbers<[1], [0], [0], [1], [0, 0, 1, 1], [], []>} : vector<8x128xbf16>, vector<128x128xbf16>, vector<8x128xf32> -> vector<8x128xf32>
    %18 = arith.mulf %13, %5 : vector<8x128xf32>
    %19 = arith.index_cast %c0_i32_12 : i32 to index
    %c0_13 = arith.constant 0 : index
    %c0_14 = arith.constant 0 : index
    %20 = vector.load %arg1[%19, %c0_13, %c0_14] : memref<8x8x128xf32, #tpu.memory_space<vmem>>, vector<1x8x128xf32>
    %21 = vector.shape_cast %20 : vector<1x8x128xf32> to vector<8x128xf32>
    %22 = arith.addf %21, %17 : vector<8x128xf32>
    %23 = arith.addf %18, %22 : vector<8x128xf32>
    %24 = arith.mulf %14, %8 : vector<8x128xf32>
    %25 = arith.addf %24, %23 : vector<8x128xf32>
    %26 = arith.cmpf oge, %25, %11 : vector<8x128xf32>
    %27 = arith.extui %26 : vector<8x128xi1> to vector<8x128xi32>
    %28 = arith.sitofp %27 : vector<8x128xi32> to vector<8x128xf32>
    %cst_15 = arith.constant 0.000000e+00 : f32
    %29 = vector.broadcast %cst_15 : f32 to vector<8x128xf32>
    %30 = arith.select %26, %29, %25 : vector<8x128xi1>, vector<8x128xf32>
    %c8_i32 = arith.constant 8 : i32
    %31 = arith.muli %c0_i32_12, %c8_i32 : i32
    %32 = tpu.assume_multiple %31, 8 : i32
    %33 = arith.index_cast %32 : i32 to index
    %c0_16 = arith.constant 0 : index
    %34 = vector.load %arg8[%33, %c0_16] : memref<64x128xf32, #tpu.memory_space<vmem>>, vector<8x128xf32>
    tpu.vector_store %arg8[%33, %c0_16], %28 {strides = array<i32>} : memref<64x128xf32, #tpu.memory_space<vmem>>, vector<8x128xf32>,
    %35 = arith.truncf %28 : vector<8x128xf32> to vector<8x128xbf16>
    %c1_i32 = arith.constant 1 : i32
    %cst_17 = arith.constant dense<0.000000e+00> : vector<8x128xf32>
    %36 = tpu.matmul %35, %12, %cst_17 {dimension_numbers = #tpu.dot_dimension_numbers<[1], [0], [0], [1], [0, 0, 1, 1], [], []>} : vector<8x128xbf16>, vector<128x128xbf16>, vector<8x128xf32> -> vector<8x128xf32>
    %37 = arith.mulf %23, %5 : vector<8x128xf32>
    %38 = arith.index_cast %c1_i32 : i32 to index
    %c0_18 = arith.constant 0 : index
    %c0_19 = arith.constant 0 : index
    %39 = vector.load %arg1[%38, %c0_18, %c0_19] : memref<8x8x128xf32, #tpu.memory_space<vmem>>, vector<1x8x128xf32>
    %40 = vector.shape_cast %39 : vector<1x8x128xf32> to vector<8x128xf32>
    %41 = arith.addf %40, %36 : vector<8x128xf32>
    %42 = arith.addf %37, %41 : vector<8x128xf32>
    %43 = arith.mulf %30, %8 : vector<8x128xf32>
    %44 = arith.addf %43, %42 : vector<8x128xf32>
    %45 = arith.cmpf oge, %44, %11 : vector<8x128xf32>
    %46 = arith.extui %45 : vector<8x128xi1> to vector<8x128xi32>
    %47 = arith.sitofp %46 : vector<8x128xi32> to vector<8x128xf32>
    %cst_20 = arith.constant 0.000000e+00 : f32
    %48 = vector.broadcast %cst_20 : f32 to vector<8x128xf32>
    %49 = arith.select %45, %48, %44 : vector<8x128xi1>, vector<8x128xf32>
    %c8_i32_21 = arith.constant 8 : i32
    %50 = arith.muli %c1_i32, %c8_i32_21 : i32
    %51 = tpu.assume_multiple %50, 8 : i32
    %52 = arith.index_cast %51 : i32 to index
    %c0_22 = arith.constant 0 : index
    %53 = vector.load %arg8[%52, %c0_22] : memref<64x128xf32, #tpu.memory_space<vmem>>, vector<8x128xf32>
    tpu.vector_store %arg8[%52, %c0_22], %47 {strides = array<i32>} : memref<64x128xf32, #tpu.memory_space<vmem>>, vector<8x128xf32>,
    %54 = arith.truncf %47 : vector<8x128xf32> to vector<8x128xbf16>
    %c2_i32 = arith.constant 2 : i32
    %cst_23 = arith.constant dense<0.000000e+00> : vector<8x128xf32>
    %55 = tpu.matmul %54, %12, %cst_23 {dimension_numbers = #tpu.dot_dimension_numbers<[1], [0], [0], [1], [0, 0, 1, 1], [], []>} : vector<8x128xbf16>, vector<128x128xbf16>, vector<8x128xf32> -> vector<8x128xf32>
    %56 = arith.mulf %42, %5 : vector<8x128xf32>
    %57 = arith.index_cast %c2_i32 : i32 to index
    %c0_24 = arith.constant 0 : index
    %c0_25 = arith.constant 0 : index
    %58 = vector.load %arg1[%57, %c0_24, %c0_25] : memref<8x8x128xf32, #tpu.memory_space<vmem>>, vector<1x8x128xf32>
    %59 = vector.shape_cast %58 : vector<1x8x128xf32> to vector<8x128xf32>
    %60 = arith.addf %59, %55 : vector<8x128xf32>
    %61 = arith.addf %56, %60 : vector<8x128xf32>
    %62 = arith.mulf %49, %8 : vector<8x128xf32>
    %63 = arith.addf %62, %61 : vector<8x128xf32>
    %64 = arith.cmpf oge, %63, %11 : vector<8x128xf32>
    %65 = arith.extui %64 : vector<8x128xi1> to vector<8x128xi32>
    %66 = arith.sitofp %65 : vector<8x128xi32> to vector<8x128xf32>
    %cst_26 = arith.constant 0.000000e+00 : f32
    %67 = vector.broadcast %cst_26 : f32 to vector<8x128xf32>
    %68 = arith.select %64, %67, %63 : vector<8x128xi1>, vector<8x128xf32>
    %c8_i32_27 = arith.constant 8 : i32
    %69 = arith.muli %c2_i32, %c8_i32_27 : i32
    %70 = tpu.assume_multiple %69, 8 : i32
    %71 = arith.index_cast %70 : i32 to index
    %c0_28 = arith.constant 0 : index
    %72 = vector.load %arg8[%71, %c0_28] : memref<64x128xf32, #tpu.memory_space<vmem>>, vector<8x128xf32>
    tpu.vector_store %arg8[%71, %c0_28], %66 {strides = array<i32>} : memref<64x128xf32, #tpu.memory_space<vmem>>, vector<8x128xf32>,
    %73 = arith.truncf %66 : vector<8x128xf32> to vector<8x128xbf16>
    %c3_i32 = arith.constant 3 : i32
    %cst_29 = arith.constant dense<0.000000e+00> : vector<8x128xf32>
    %74 = tpu.matmul %73, %12, %cst_29 {dimension_numbers = #tpu.dot_dimension_numbers<[1], [0], [0], [1], [0, 0, 1, 1], [], []>} : vector<8x128xbf16>, vector<128x128xbf16>, vector<8x128xf32> -> vector<8x128xf32>
    %75 = arith.mulf %61, %5 : vector<8x128xf32>
    %76 = arith.index_cast %c3_i32 : i32 to index
    %c0_30 = arith.constant 0 : index
    %c0_31 = arith.constant 0 : index
    %77 = vector.load %arg1[%76, %c0_30, %c0_31] : memref<8x8x128xf32, #tpu.memory_space<vmem>>, vector<1x8x128xf32>
    %78 = vector.shape_cast %77 : vector<1x8x128xf32> to vector<8x128xf32>
    %79 = arith.addf %78, %74 : vector<8x128xf32>
    %80 = arith.addf %75, %79 : vector<8x128xf32>
    %81 = arith.mulf %68, %8 : vector<8x128xf32>
    %82 = arith.addf %81, %80 : vector<8x128xf32>
    %83 = arith.cmpf oge, %82, %11 : vector<8x128xf32>
    %84 = arith.extui %83 : vector<8x128xi1> to vector<8x128xi32>
    %85 = arith.sitofp %84 : vector<8x128xi32> to vector<8x128xf32>
    %cst_32 = arith.constant 0.000000e+00 : f32
    %86 = vector.broadcast %cst_32 : f32 to vector<8x128xf32>
    %87 = arith.select %83, %86, %82 : vector<8x128xi1>, vector<8x128xf32>
    %c8_i32_33 = arith.constant 8 : i32
    %88 = arith.muli %c3_i32, %c8_i32_33 : i32
    %89 = tpu.assume_multiple %88, 8 : i32
    %90 = arith.index_cast %89 : i32 to index
    %c0_34 = arith.constant 0 : index
    %91 = vector.load %arg8[%90, %c0_34] : memref<64x128xf32, #tpu.memory_space<vmem>>, vector<8x128xf32>
    tpu.vector_store %arg8[%90, %c0_34], %85 {strides = array<i32>} : memref<64x128xf32, #tpu.memory_space<vmem>>, vector<8x128xf32>,
    %92 = arith.truncf %85 : vector<8x128xf32> to vector<8x128xbf16>
    %c4_i32 = arith.constant 4 : i32
    %cst_35 = arith.constant dense<0.000000e+00> : vector<8x128xf32>
    %93 = tpu.matmul %92, %12, %cst_35 {dimension_numbers = #tpu.dot_dimension_numbers<[1], [0], [0], [1], [0, 0, 1, 1], [], []>} : vector<8x128xbf16>, vector<128x128xbf16>, vector<8x128xf32> -> vector<8x128xf32>
    %94 = arith.mulf %80, %5 : vector<8x128xf32>
    %95 = arith.index_cast %c4_i32 : i32 to index
    %c0_36 = arith.constant 0 : index
    %c0_37 = arith.constant 0 : index
    %96 = vector.load %arg1[%95, %c0_36, %c0_37] : memref<8x8x128xf32, #tpu.memory_space<vmem>>, vector<1x8x128xf32>
    %97 = vector.shape_cast %96 : vector<1x8x128xf32> to vector<8x128xf32>
    %98 = arith.addf %97, %93 : vector<8x128xf32>
    %99 = arith.addf %94, %98 : vector<8x128xf32>
    %100 = arith.mulf %87, %8 : vector<8x128xf32>
    %101 = arith.addf %100, %99 : vector<8x128xf32>
    %102 = arith.cmpf oge, %101, %11 : vector<8x128xf32>
    %103 = arith.extui %102 : vector<8x128xi1> to vector<8x128xi32>
    %104 = arith.sitofp %103 : vector<8x128xi32> to vector<8x128xf32>
    %cst_38 = arith.constant 0.000000e+00 : f32
    %105 = vector.broadcast %cst_38 : f32 to vector<8x128xf32>
    %106 = arith.select %102, %105, %101 : vector<8x128xi1>, vector<8x128xf32>
    %c8_i32_39 = arith.constant 8 : i32
    %107 = arith.muli %c4_i32, %c8_i32_39 : i32
    %108 = tpu.assume_multiple %107, 8 : i32
    %109 = arith.index_cast %108 : i32 to index
    %c0_40 = arith.constant 0 : index
    %110 = vector.load %arg8[%109, %c0_40] : memref<64x128xf32, #tpu.memory_space<vmem>>, vector<8x128xf32>
    tpu.vector_store %arg8[%109, %c0_40], %104 {strides = array<i32>} : memref<64x128xf32, #tpu.memory_space<vmem>>, vector<8x128xf32>,
    %111 = arith.truncf %104 : vector<8x128xf32> to vector<8x128xbf16>
    %c5_i32 = arith.constant 5 : i32
    %cst_41 = arith.constant dense<0.000000e+00> : vector<8x128xf32>
    %112 = tpu.matmul %111, %12, %cst_41 {dimension_numbers = #tpu.dot_dimension_numbers<[1], [0], [0], [1], [0, 0, 1, 1], [], []>} : vector<8x128xbf16>, vector<128x128xbf16>, vector<8x128xf32> -> vector<8x128xf32>
    %113 = arith.mulf %99, %5 : vector<8x128xf32>
    %114 = arith.index_cast %c5_i32 : i32 to index
    %c0_42 = arith.constant 0 : index
    %c0_43 = arith.constant 0 : index
    %115 = vector.load %arg1[%114, %c0_42, %c0_43] : memref<8x8x128xf32, #tpu.memory_space<vmem>>, vector<1x8x128xf32>
    %116 = vector.shape_cast %115 : vector<1x8x128xf32> to vector<8x128xf32>
    %117 = arith.addf %116, %112 : vector<8x128xf32>
    %118 = arith.addf %113, %117 : vector<8x128xf32>
    %119 = arith.mulf %106, %8 : vector<8x128xf32>
    %120 = arith.addf %119, %118 : vector<8x128xf32>
    %121 = arith.cmpf oge, %120, %11 : vector<8x128xf32>
    %122 = arith.extui %121 : vector<8x128xi1> to vector<8x128xi32>
    %123 = arith.sitofp %122 : vector<8x128xi32> to vector<8x128xf32>
    %cst_44 = arith.constant 0.000000e+00 : f32
    %124 = vector.broadcast %cst_44 : f32 to vector<8x128xf32>
    %125 = arith.select %121, %124, %120 : vector<8x128xi1>, vector<8x128xf32>
    %c8_i32_45 = arith.constant 8 : i32
    %126 = arith.muli %c5_i32, %c8_i32_45 : i32
    %127 = tpu.assume_multiple %126, 8 : i32
    %128 = arith.index_cast %127 : i32 to index
    %c0_46 = arith.constant 0 : index
    %129 = vector.load %arg8[%128, %c0_46] : memref<64x128xf32, #tpu.memory_space<vmem>>, vector<8x128xf32>
    tpu.vector_store %arg8[%128, %c0_46], %123 {strides = array<i32>} : memref<64x128xf32, #tpu.memory_space<vmem>>, vector<8x128xf32>,
    %130 = arith.truncf %123 : vector<8x128xf32> to vector<8x128xbf16>
    %c6_i32 = arith.constant 6 : i32
    %cst_47 = arith.constant dense<0.000000e+00> : vector<8x128xf32>
    %131 = tpu.matmul %130, %12, %cst_47 {dimension_numbers = #tpu.dot_dimension_numbers<[1], [0], [0], [1], [0, 0, 1, 1], [], []>} : vector<8x128xbf16>, vector<128x128xbf16>, vector<8x128xf32> -> vector<8x128xf32>
    %132 = arith.mulf %118, %5 : vector<8x128xf32>
    %133 = arith.index_cast %c6_i32 : i32 to index
    %c0_48 = arith.constant 0 : index
    %c0_49 = arith.constant 0 : index
    %134 = vector.load %arg1[%133, %c0_48, %c0_49] : memref<8x8x128xf32, #tpu.memory_space<vmem>>, vector<1x8x128xf32>
    %135 = vector.shape_cast %134 : vector<1x8x128xf32> to vector<8x128xf32>
    %136 = arith.addf %135, %131 : vector<8x128xf32>
    %137 = arith.addf %132, %136 : vector<8x128xf32>
    %138 = arith.mulf %125, %8 : vector<8x128xf32>
    %139 = arith.addf %138, %137 : vector<8x128xf32>
    %140 = arith.cmpf oge, %139, %11 : vector<8x128xf32>
    %141 = arith.extui %140 : vector<8x128xi1> to vector<8x128xi32>
    %142 = arith.sitofp %141 : vector<8x128xi32> to vector<8x128xf32>
    %cst_50 = arith.constant 0.000000e+00 : f32
    %143 = vector.broadcast %cst_50 : f32 to vector<8x128xf32>
    %144 = arith.select %140, %143, %139 : vector<8x128xi1>, vector<8x128xf32>
    %c8_i32_51 = arith.constant 8 : i32
    %145 = arith.muli %c6_i32, %c8_i32_51 : i32
    %146 = tpu.assume_multiple %145, 8 : i32
    %147 = arith.index_cast %146 : i32 to index
    %c0_52 = arith.constant 0 : index
    %148 = vector.load %arg8[%147, %c0_52] : memref<64x128xf32, #tpu.memory_space<vmem>>, vector<8x128xf32>
    tpu.vector_store %arg8[%147, %c0_52], %142 {strides = array<i32>} : memref<64x128xf32, #tpu.memory_space<vmem>>, vector<8x128xf32>,
    %149 = arith.truncf %142 : vector<8x128xf32> to vector<8x128xbf16>
    %c7_i32 = arith.constant 7 : i32
    %cst_53 = arith.constant dense<0.000000e+00> : vector<8x128xf32>
    %150 = tpu.matmul %149, %12, %cst_53 {dimension_numbers = #tpu.dot_dimension_numbers<[1], [0], [0], [1], [0, 0, 1, 1], [], []>} : vector<8x128xbf16>, vector<128x128xbf16>, vector<8x128xf32> -> vector<8x128xf32>
    %151 = arith.mulf %137, %5 : vector<8x128xf32>
    %152 = arith.index_cast %c7_i32 : i32 to index
    %c0_54 = arith.constant 0 : index
    %c0_55 = arith.constant 0 : index
    %153 = vector.load %arg1[%152, %c0_54, %c0_55] : memref<8x8x128xf32, #tpu.memory_space<vmem>>, vector<1x8x128xf32>
    %154 = vector.shape_cast %153 : vector<1x8x128xf32> to vector<8x128xf32>
    %155 = arith.addf %154, %150 : vector<8x128xf32>
    %156 = arith.addf %151, %155 : vector<8x128xf32>
    %157 = arith.mulf %144, %8 : vector<8x128xf32>
    %158 = arith.addf %157, %156 : vector<8x128xf32>
    %159 = arith.cmpf oge, %158, %11 : vector<8x128xf32>
    %160 = arith.extui %159 : vector<8x128xi1> to vector<8x128xi32>
    %161 = arith.sitofp %160 : vector<8x128xi32> to vector<8x128xf32>
    %cst_56 = arith.constant 0.000000e+00 : f32
    %162 = vector.broadcast %cst_56 : f32 to vector<8x128xf32>
    %163 = arith.select %159, %162, %158 : vector<8x128xi1>, vector<8x128xf32>
    %c8_i32_57 = arith.constant 8 : i32
    %164 = arith.muli %c7_i32, %c8_i32_57 : i32
    %165 = tpu.assume_multiple %164, 8 : i32
    %166 = arith.index_cast %165 : i32 to index
    %c0_58 = arith.constant 0 : index
    %167 = vector.load %arg8[%166, %c0_58] : memref<64x128xf32, #tpu.memory_space<vmem>>, vector<8x128xf32>
    tpu.vector_store %arg8[%166, %c0_58], %161 {strides = array<i32>} : memref<64x128xf32, #tpu.memory_space<vmem>>, vector<8x128xf32>,
    %168 = arith.truncf %161 : vector<8x128xf32> to vector<8x128xbf16>
    %c8_i32_59 = arith.constant 8 : i32
    %c0_60 = arith.constant 0 : index
    %c0_61 = arith.constant 0 : index
    %169 = vector.load %arg5[%c0_60, %c0_61] : memref<8x128xf32, #tpu.memory_space<vmem>>, vector<8x128xf32>
    tpu.vector_store %arg5[%c0_60, %c0_61], %156 {strides = array<i32>} : memref<8x128xf32, #tpu.memory_space<vmem>>, vector<8x128xf32>,
    %c0_62 = arith.constant 0 : index
    %c0_63 = arith.constant 0 : index
    %170 = vector.load %arg6[%c0_62, %c0_63] : memref<8x128xf32, #tpu.memory_space<vmem>>, vector<8x128xf32>
    tpu.vector_store %arg6[%c0_62, %c0_63], %163 {strides = array<i32>} : memref<8x128xf32, #tpu.memory_space<vmem>>, vector<8x128xf32>,
    %171 = arith.extf %168 : vector<8x128xbf16> to vector<8x128xf32>
    %c0_64 = arith.constant 0 : index
    %c0_65 = arith.constant 0 : index
    %172 = vector.load %arg7[%c0_64, %c0_65] : memref<8x128xf32, #tpu.memory_space<vmem>>, vector<8x128xf32>
    tpu.vector_store %arg7[%c0_64, %c0_65], %171 {strides = array<i32>} : memref<8x128xf32, #tpu.memory_space<vmem>>, vector<8x128xf32>,
    %c0_66 = arith.constant 0 : index
    %c0_67 = arith.constant 0 : index
    %173 = vector.load %arg8[%c0_66, %c0_67] : memref<64x128xf32, #tpu.memory_space<vmem>>, vector<64x128xf32>
    %174 = arith.truncf %173 : vector<64x128xf32> to vector<64x128xbf16>
    %c0_68 = arith.constant 0 : index
    %c0_69 = arith.constant 0 : index
    %175 = vector.load %arg4[%c0_68, %c0_69] : memref<64x128xbf16, #tpu.memory_space<vmem>>, vector<64x128xbf16>
    tpu.vector_store %arg4[%c0_68, %c0_69], %174 {strides = array<i32>} : memref<64x128xbf16, #tpu.memory_space<vmem>>, vector<64x128xbf16>,
    return
  }
  func.func @transform_0(%arg0: i32) -> (i32, i32, i32) {
    %c0_i32 = arith.constant 0 : i32
    %c0_i32_0 = arith.constant 0 : i32
    %c0_i32_1 = arith.constant 0 : i32
    return %arg0, %c0_i32, %c0_i32_0 : i32, i32, i32
  }
  func.func @transform_1(%arg0: i32) -> (i32, i32) {
    %c0_i32 = arith.constant 0 : i32
    %c0_i32_0 = arith.constant 0 : i32
    %c0_i32_1 = arith.constant 0 : i32
    return %c0_i32, %c0_i32_0 : i32, i32
  }
  func.func @transform_2(%arg0: i32) -> (i32, i32) {
    %c0_i32 = arith.constant 0 : i32
    %c0_i32_0 = arith.constant 0 : i32
    %c0_i32_1 = arith.constant 0 : i32
    return %c0_i32, %c0_i32_0 : i32, i32
  }
  func.func @transform_3(%arg0: i32) -> (i32, i32) {
    %c0_i32 = arith.constant 0 : i32
    %c0_i32_0 = arith.constant 0 : i32
    return %arg0, %c0_i32 : i32, i32
  }
}

</mosaic_0001>

<bundles_post_ra>
// kernel: tpu_custom_call.1
= control target key start
LH: loop header
LB: loop body
LE: loop exit
PB: predicated region body
PF: predicated region fallthrough
CT: control target
= control target key end

     0   :  { %8 = vsyncpa [#allocation7], 0  ;;  %s1338_s0 = inlined_call_operand.hbm [shape: f32[8,8,128], index: 0, kind: input, shape index: {}]   ;;  %s1339_s1 = inlined_call_operand.hbm [shape: bf16[128,128], index: 1, kind: input, shape index: {}]   ;;  %s1340_s2 = inlined_call_operand.hbm [shape: f32[8,128], index: 2, kind: input, shape index: {}]   ;;  %s1341_s3 = inlined_call_operand.hbm [shape: bf16[64,128], index: 3, kind: output, shape index: {}]  }
   0x1   :  { %9 = vsyncpa [#allocation10], 0 }
   0x2   :  { %10 = vsyncpa [#allocation8], 0  ;;  %s1055_s12 = smov [#allocation9]  }
   0x3   :  { %s28_s13 = sshll.u32 %s1055_s12, 4  ;;  %s29_s13 = int_to_ptr.vmem [resolvable:$true] %s28_s13 }
   0x4   :  { %s977_s14 = scalar_lea.vmem %s29_s13, 1024  ;;  %p982_p1 = scmp.lt.s32.totalorder %s29_s13, %s29_s13 }
   0x5   :  { %p978_p0 = scmp.ne.s32.totalorder %s29_s13, %s977_s14  ;;  %p983_p2 = scmp.lt.s32.totalorder %s977_s14, %s977_s14 }
   0x7   :  { %p984_p3 = por %p983_p2, %p982_p1 }
   0x9   :  { %p985_p4 = pnand %p984_p3, %p978_p0 }
   0xb   :  { %988 = shalt.err (!%p985_p4)
}
   0xc   :  { %s1056_s15 = smov 64   ;;  %s1057_s16 = smov 4  }
   0xd   :  { %34 = dma.hbm_to_vmem [thread:$0]  %s1339_s1, 1024, %s29_s13, [#allocation10], %s1056_s15, %s1056_s15, %s1057_s16  }
   0xe   :  { %s1058_s19 = smov [#allocation6]  }
   0xf   :  { %s16_s20 = sshll.u32 %s1058_s19, 4  ;;  %s17_s20 = int_to_ptr.vmem [resolvable:$true] %s16_s20 }
  0x10   :  { %s997_s21 = scalar_lea.vmem %s17_s20, 1024  ;;  %p1002_p6 = scmp.lt.s32.totalorder %s17_s20, %s17_s20 }
  0x11   :  { %p998_p5 = scmp.ne.s32.totalorder %s17_s20, %s997_s21  ;;  %p1003_p7 = scmp.lt.s32.totalorder %s997_s21, %s997_s21 }
  0x13   :  { %p1004_p8 = por %p1003_p7, %p1002_p6 }
  0x15   :  { %p1005_p9 = pnand %p1004_p8, %p998_p5 }
  0x17   :  { %1008 = shalt.err (!%p1005_p9)
}
  0x18   :  { %s1059_s22 = smov 128   ;;  %s1060_s23 = smov 8  }
  0x19   :  { %22 = dma.hbm_to_vmem [thread:$0]  %s1338_s0, 1024, %s17_s20, [#allocation7], %s1059_s22, %s1059_s22, %s1060_s23  }
  0x1a   :  { %s1061_s26 = smov [#allocation11]  }
  0x1b   :  { %s41_s27 = sshll.u32 %s1061_s26, 4  ;;  %s42_s27 = int_to_ptr.vmem [resolvable:$true] %s41_s27 }
  0x1c   :  { %s1017_s1 = scalar_lea.vmem %s42_s27, 128  ;;  %p1022_p11 = scmp.lt.s32.totalorder %s42_s27, %s42_s27 }
  0x1d   :  { %p1018_p10 = scmp.ne.s32.totalorder %s42_s27, %s1017_s1  ;;  %p1023_p12 = scmp.lt.s32.totalorder %s1017_s1, %s1017_s1 }
  0x1f   :  { %p1024_p13 = por %p1023_p12, %p1022_p11 }
  0x21   :  { %p1025_p0 = pnand %p1024_p13, %p1018_p10 }
  0x23   :  { %1028 = shalt.err (!%p1025_p0)
}
  0x24   :  { %44 = dma.hbm_to_vmem [thread:$0]  %s1340_s2, 128, %s42_s27, [#allocation10]  }
  0x25   :  { %1049 = dma.done.wait [#allocation7], 1024  }
  0x26   :  { %1050 = vsyncadd [#allocation7], 4294966272 }
  0x27   :  { %1051 = dma.done.wait [#allocation10], 1152  }
  0x28   :  { %1052 = vsyncadd [#allocation10], 4294966144  ;;  %v1062_v0 = vmov 0.0   ;;  %vm1063_vm0 = vmmov 0   ;;  %v1105_v1 = vld [vmem:[#allocation9 + $0x38] sm:$0xff]   ;;  %v1108_v2 = vld [vmem:[#allocation9 + $0x30] sm:$0xff]  }
  0x29   :  { %789 = vmatprep.subr.bf16.mxu0 %v1062_v0  ;;  %805 = vmatprep.mubr.msk.bf16.mxu0 %vm1063_vm0, %v1062_v0  ;;  %v1114_v3 = vld [vmem:[#allocation9 + $0x28] sm:$0xff]   ;;  %v1120_v4 = vld [vmem:[#allocation9 + $0x20] sm:$0xff]   ;;  %v1126_v5 = vld [vmem:[#allocation9 + $0x18] sm:$0xff]   ;;  %v1064_v9 = vmov 0.0|0.0   ;;  %v1065_v24 = vmov 1.0|1.0  }
  0x2a   :  { %809 = vmatprep.subr.bf16.mxu1 %v1062_v0  ;;  %825 = vmatprep.mubr.msk.bf16.mxu1 %vm1063_vm0, %v1062_v0  ;;  %v1132_v6 = vld [vmem:[#allocation9 + $0x10] sm:$0xff]   ;;  %v1138_v7 = vld [vmem:[#allocation9 + $0x8] sm:$0xff]   ;;  %v1144_v8 = vld [vmem:[#allocation9] sm:$0xff]   ;;  %s1066_s0 = smov [#allocation12]  }
  0x2b   :  { %790 = vmatpush3.bf16.msra.mxu0 %v1105_v1  ;;  %810 = vmatpush3.bf16.msra.mxu1 %v1105_v1  ;;  %v1171_v10 = vld [vmem:[#allocation11] ss:$0 sm:$0xff]  ;;  %v1173_v11 = vld [vmem:[#allocation11 + $0x1] ss:$0 sm:$0xff]  ;;  %v1177_v20 = vld [vmem:[#allocation11 + $0x2] ss:$0 sm:$0xff] }
  0x2c   :  { %791 = vmatprep.subr.bf16.mxu0 %v1062_v0  ;;  %811 = vmatprep.subr.bf16.mxu1 %v1062_v0  ;;  %v186_v12 = vld [vmem:[#allocation6] sm:$0xff]  ;;  %v185_v13 = vmul.f32 0.0, %v1171_v10  ;;  %v189_v16 = vmul.f32 0.0, %v1173_v11  ;;  %v239_v25 = vld [vmem:[#allocation6 + $0x8] sm:$0xff]  ;;  %v293_v39 = vld [vmem:[#allocation6 + $0x10] sm:$0xff]  ;;  %s632_s2 = sshll.u32 %s1066_s0, 4  ;;  %s633_s2 = int_to_ptr.vmem [resolvable:$true] %s632_s2 }
  0x2d   :  { %v347_v50 = vld [vmem:[#allocation6 + $0x18] sm:$0xff]  ;;  %s1029_s30 = scalar_lea.vmem %s633_s2, 512  ;;  %p1034_p2 = scmp.lt.s32.totalorder %s633_s2, %s633_s2 }
  0x2e   :  { %p1030_p1 = scmp.ne.s32.totalorder %s633_s2, %s1029_s30  ;;  %p1035_p3 = scmp.lt.s32.totalorder %s1029_s30, %s1029_s30 }
  0x2f   :  { %792 = vmatpush3.bf16.msra.mxu0 %v1108_v2  ;;  %812 = vmatpush3.bf16.msra.mxu1 %v1108_v2 }
  0x30   :  { %793 = vmatprep.subr.bf16.mxu0 %v1062_v0  ;;  %813 = vmatprep.subr.bf16.mxu1 %v1062_v0  ;;  %p1036_p4 = por %p1035_p3, %p1034_p2 }
  0x32   :  { %p1037_p5 = pnand %p1036_p4, %p1030_p1 }
  0x33   :  { %794 = vmatpush3.bf16.msra.mxu0 %v1114_v3  ;;  %814 = vmatpush3.bf16.msra.mxu1 %v1114_v3 }
  0x34   :  { %795 = vmatprep.subr.bf16.mxu0 %v1062_v0  ;;  %815 = vmatprep.subr.bf16.mxu1 %v1062_v0 }
  0x37   :  { %796 = vmatpush3.bf16.msra.mxu0 %v1120_v4  ;;  %816 = vmatpush3.bf16.msra.mxu1 %v1120_v4 }
  0x38   :  { %797 = vmatprep.subr.bf16.mxu0 %v1062_v0  ;;  %817 = vmatprep.subr.bf16.mxu1 %v1062_v0 }
  0x3b   :  { %798 = vmatpush3.bf16.msra.mxu0 %v1126_v5  ;;  %818 = vmatpush3.bf16.msra.mxu1 %v1126_v5 }
  0x3c   :  { %799 = vmatprep.subr.bf16.mxu0 %v1062_v0  ;;  %819 = vmatprep.subr.bf16.mxu1 %v1062_v0 }
  0x3f   :  { %800 = vmatpush3.bf16.msra.mxu0 %v1132_v6  ;;  %820 = vmatpush3.bf16.msra.mxu1 %v1132_v6 }
  0x40   :  { %801 = vmatprep.subr.bf16.mxu0 %v1062_v0  ;;  %821 = vmatprep.subr.bf16.mxu1 %v1062_v0 }
  0x43   :  { %802 = vmatpush3.bf16.msra.mxu0 %v1138_v7  ;;  %822 = vmatpush3.bf16.msra.mxu1 %v1138_v7 }
  0x44   :  { %803 = vmatprep.subr.bf16.mxu0 %v1062_v0  ;;  %823 = vmatprep.subr.bf16.mxu1 %v1062_v0 }
  0x47   :  { %804 = vmatpush3.bf16.msra.mxu0 %v1144_v8  ;;  %824 = vmatpush3.bf16.msra.mxu1 %v1144_v8 }
  0x48   :  { %829 = vmatprep.subr.bf16.mxu0 %v1062_v0  ;;  %849 = vmatprep.subr.bf16.mxu1 %v1062_v0 }
  0x4a   :  { %806 = vmatmul.mubr.bf16.vlgmr.msra.gmra.mxu0 %v1064_v9  ;;  %v401_v9 = vld [vmem:[#allocation6 + $0x20] sm:$0xff] }
  0x4b   :  { %830 = vmatpush3.bf16.msra.mxu0 %v1105_v1  ;;  %845 = vmatprep.mubr.msk.bf16.mxu0 %vm1063_vm0, %v1062_v0 }
  0x4c   :  { %831 = vmatprep.subr.bf16.mxu0 %v1062_v0 }
  0x4f   :  { %832 = vmatpush3.bf16.msra.mxu0 %v1108_v2 }
  0x50   :  { %833 = vmatprep.subr.bf16.mxu0 %v1062_v0 }
  0x53   :  { %834 = vmatpush3.bf16.msra.mxu0 %v1114_v3 }
  0x54   :  { %835 = vmatprep.subr.bf16.mxu0 %v1062_v0 }
  0x57   :  { %836 = vmatpush3.bf16.msra.mxu0 %v1120_v4 }
  0x58   :  { %837 = vmatprep.subr.bf16.mxu0 %v1062_v0 }
  0x5b   :  { %838 = vmatpush3.bf16.msra.mxu0 %v1126_v5 }
  0x5c   :  { %839 = vmatprep.subr.bf16.mxu0 %v1062_v0 }
  0x5f   :  { %840 = vmatpush3.bf16.msra.mxu0 %v1132_v6 }
  0x60   :  { %841 = vmatprep.subr.bf16.mxu0 %v1062_v0 }
  0x63   :  { %842 = vmatpush3.bf16.msra.mxu0 %v1138_v7 }
  0x64   :  { %843 = vmatprep.subr.bf16.mxu0 %v1062_v0 }
  0x67   :  { %844 = vmatpush3.bf16.msra.mxu0 %v1144_v8 }
  0x68   :  { %869 = vmatprep.subr.bf16.mxu0 %v1062_v0 }
 0x10a   :  { %v179_v14 = vpop.f32.mrf.mxu0 }
 0x10b   :  { %v187_v15 = vadd.f32 %v186_v12, %v179_v14 }
 0x10c   :  { %v807_v17 = vpop.f32.mrf.mxu0 }
 0x10d   :  { %v188_v18 = vadd.f32 %v187_v15, %v185_v13 }
 0x10e   :  { %v182_v19 = vpop.f32.mrf.mxu0 }
 0x10f   :  { %v190_v21 = vadd.f32 %v189_v16, %v188_v18  ;;  %v237_v27 = vmul.f32 %v1171_v10, %v188_v18 }
 0x110   :  { %v808_v22 = vpop.f32.mrf.mxu0 }
 0x111   :  { %vm191_vm1 = vcmp.ge.f32.partialorder %v190_v21, %v1177_v20 }
 0x112   :  { %vm657_vm2 = vmpackc.low %vm191_vm1, %vm191_vm1  ;;  %v194_v23 = vsel %vm191_vm1, 0.0, %v190_v21  ;;  %v656_v35 = vsel %vm191_vm1, 1.0, %v1062_v0 }
 0x113   :  { %826 = vmatmul.mubr.msk.bf16.vlgmr.msra.gmra.mxu1 %vm657_vm2, %v1065_v24  ;;  %v242_v31 = vmul.f32 %v1173_v11, %v194_v23 }
 0x114   :  { %850 = vmatpush3.bf16.msra.mxu1 %v1105_v1  ;;  %865 = vmatprep.mubr.msk.bf16.mxu1 %vm1063_vm0, %v1062_v0 }
 0x115   :  { %851 = vmatprep.subr.bf16.mxu1 %v1062_v0 }
 0x118   :  { %852 = vmatpush3.bf16.msra.mxu1 %v1108_v2 }
 0x119   :  { %853 = vmatprep.subr.bf16.mxu1 %v1062_v0 }
 0x11c   :  { %854 = vmatpush3.bf16.msra.mxu1 %v1114_v3 }
 0x11d   :  { %855 = vmatprep.subr.bf16.mxu1 %v1062_v0 }
 0x120   :  { %856 = vmatpush3.bf16.msra.mxu1 %v1120_v4 }
 0x121   :  { %857 = vmatprep.subr.bf16.mxu1 %v1062_v0 }
 0x124   :  { %858 = vmatpush3.bf16.msra.mxu1 %v1126_v5 }
 0x125   :  { %859 = vmatprep.subr.bf16.mxu1 %v1062_v0 }
 0x128   :  { %860 = vmatpush3.bf16.msra.mxu1 %v1132_v6 }
 0x129   :  { %861 = vmatprep.subr.bf16.mxu1 %v1062_v0 }
 0x12c   :  { %862 = vmatpush3.bf16.msra.mxu1 %v1138_v7 }
 0x12d   :  { %863 = vmatprep.subr.bf16.mxu1 %v1062_v0 }
 0x130   :  { %864 = vmatpush3.bf16.msra.mxu1 %v1144_v8 }
 0x131   :  { %889 = vmatprep.subr.bf16.mxu1 %v1062_v0 }
 0x1d3   :  { %v231_v26 = vpop.f32.mrf.mxu1 }
 0x1d4   :  { %v240_v28 = vadd.f32 %v239_v25, %v231_v26 }
 0x1d5   :  { %v827_v29 = vpop.f32.mrf.mxu1 }
 0x1d6   :  { %v241_v30 = vadd.f32 %v240_v28, %v237_v27 }
 0x1d7   :  { %v234_v32 = vpop.f32.mrf.mxu1 }
 0x1d8   :  { %v243_v33 = vadd.f32 %v242_v31, %v241_v30  ;;  %v291_v41 = vmul.f32 %v1171_v10, %v241_v30  ;;  %v509_v30 = vld [vmem:[#allocation6 + $0x30] sm:$0xff] }
 0x1d9   :  { %v828_v34 = vpop.f32.mrf.mxu1 }
 0x1da   :  { %vm244_vm3 = vcmp.ge.f32.partialorder %v243_v33, %v1177_v20 }
 0x1db   :  { %v659_v36 = vsel %vm244_vm3, 1.0, %v1062_v0  ;;  %v247_v37 = vsel %vm244_vm3, 0.0, %v243_v33  ;;  %vm660_vm4 = vmpackc.low %vm244_vm3, %vm244_vm3 }
 0x1dc   :  { %v697_v38 = vpack.c.bf16 %v659_v36, %v656_v35  ;;  %846 = vmatmul.mubr.msk.bf16.vlgmr.msra.gmra.mxu0 %vm660_vm4, %v1065_v24  ;;  %v296_v45 = vmul.f32 %v1173_v11, %v247_v37 }
 0x1dd   :  { %870 = vmatpush3.bf16.msra.mxu0 %v1105_v1  ;;  %885 = vmatprep.mubr.msk.bf16.mxu0 %vm1063_vm0, %v1062_v0 }
 0x1de   :  { %698 = vst [vmem:[#allocation12] sm:$0xff] %v697_v38   ;;  %871 = vmatprep.subr.bf16.mxu0 %v1062_v0 }
 0x1e1   :  { %872 = vmatpush3.bf16.msra.mxu0 %v1108_v2 }
 0x1e2   :  { %873 = vmatprep.subr.bf16.mxu0 %v1062_v0 }
 0x1e5   :  { %874 = vmatpush3.bf16.msra.mxu0 %v1114_v3 }
 0x1e6   :  { %875 = vmatprep.subr.bf16.mxu0 %v1062_v0 }
 0x1e9   :  { %876 = vmatpush3.bf16.msra.mxu0 %v1120_v4 }
 0x1ea   :  { %877 = vmatprep.subr.bf16.mxu0 %v1062_v0 }
 0x1ed   :  { %878 = vmatpush3.bf16.msra.mxu0 %v1126_v5 }
 0x1ee   :  { %879 = vmatprep.subr.bf16.mxu0 %v1062_v0 }
 0x1f1   :  { %880 = vmatpush3.bf16.msra.mxu0 %v1132_v6 }
 0x1f2   :  { %881 = vmatprep.subr.bf16.mxu0 %v1062_v0 }
 0x1f5   :  { %882 = vmatpush3.bf16.msra.mxu0 %v1138_v7 }
 0x1f6   :  { %883 = vmatprep.subr.bf16.mxu0 %v1062_v0 }
 0x1f9   :  { %884 = vmatpush3.bf16.msra.mxu0 %v1144_v8 }
 0x1fa   :  { %909 = vmatprep.subr.bf16.mxu0 %v1062_v0 }
 0x29c   :  { %v285_v40 = vpop.f32.mrf.mxu0 }
 0x29d   :  { %v294_v42 = vadd.f32 %v293_v39, %v285_v40 }
 0x29e   :  { %v847_v43 = vpop.f32.mrf.mxu0 }
 0x29f   :  { %v295_v44 = vadd.f32 %v294_v42, %v291_v41  ;;  %v563_v41 = vld [vmem:[#allocation6 + $0x38] sm:$0xff] }
 0x2a0   :  { %v288_v46 = vpop.f32.mrf.mxu0 }
 0x2a1   :  { %v297_v47 = vadd.f32 %v296_v45, %v295_v44  ;;  %v345_v52 = vmul.f32 %v1171_v10, %v295_v44 }
 0x2a2   :  { %v848_v48 = vpop.f32.mrf.mxu0 }
 0x2a3   :  { %vm298_vm5 = vcmp.ge.f32.partialorder %v297_v47, %v1177_v20 }
 0x2a4   :  { %v301_v49 = vsel %vm298_vm5, 0.0, %v297_v47  ;;  %vm663_vm6 = vmpackc.low %vm298_vm5, %vm298_vm5  ;;  %v662_v60 = vsel %vm298_vm5, 1.0, %v1062_v0 }
 0x2a5   :  { %866 = vmatmul.mubr.msk.bf16.vlgmr.msra.gmra.mxu1 %vm663_vm6, %v1065_v24  ;;  %v350_v56 = vmul.f32 %v1173_v11, %v301_v49 }
 0x2a6   :  { %890 = vmatpush3.bf16.msra.mxu1 %v1105_v1  ;;  %905 = vmatprep.mubr.msk.bf16.mxu1 %vm1063_vm0, %v1062_v0 }
 0x2a7   :  { %891 = vmatprep.subr.bf16.mxu1 %v1062_v0 }
 0x2aa   :  { %892 = vmatpush3.bf16.msra.mxu1 %v1108_v2 }
 0x2ab   :  { %893 = vmatprep.subr.bf16.mxu1 %v1062_v0 }
 0x2ae   :  { %894 = vmatpush3.bf16.msra.mxu1 %v1114_v3 }
 0x2af   :  { %895 = vmatprep.subr.bf16.mxu1 %v1062_v0 }
 0x2b2   :  { %896 = vmatpush3.bf16.msra.mxu1 %v1120_v4 }
 0x2b3   :  { %897 = vmatprep.subr.bf16.mxu1 %v1062_v0 }
 0x2b6   :  { %898 = vmatpush3.bf16.msra.mxu1 %v1126_v5 }
 0x2b7   :  { %899 = vmatprep.subr.bf16.mxu1 %v1062_v0 }
 0x2ba   :  { %900 = vmatpush3.bf16.msra.mxu1 %v1132_v6 }
 0x2bb   :  { %901 = vmatprep.subr.bf16.mxu1 %v1062_v0 }
 0x2be   :  { %902 = vmatpush3.bf16.msra.mxu1 %v1138_v7 }
 0x2bf   :  { %903 = vmatprep.subr.bf16.mxu1 %v1062_v0 }
 0x2c2   :  { %904 = vmatpush3.bf16.msra.mxu1 %v1144_v8 }
 0x2c3   :  { %929 = vmatprep.subr.bf16.mxu1 %v1062_v0 }
 0x365   :  { %v339_v51 = vpop.f32.mrf.mxu1 }
 0x366   :  { %v348_v53 = vadd.f32 %v347_v50, %v339_v51 }
 0x367   :  { %v867_v54 = vpop.f32.mrf.mxu1 }
 0x368   :  { %v349_v55 = vadd.f32 %v348_v53, %v345_v52 }
 0x369   :  { %v342_v57 = vpop.f32.mrf.mxu1 }
 0x36a   :  { %v351_v58 = vadd.f32 %v350_v56, %v349_v55  ;;  %v399_v13 = vmul.f32 %v1171_v10, %v349_v55 }
 0x36b   :  { %v868_v59 = vpop.f32.mrf.mxu1 }
 0x36c   :  { %vm352_vm7 = vcmp.ge.f32.partialorder %v351_v58, %v1177_v20 }
 0x36d   :  { %v665_v61 = vsel %vm352_vm7, 1.0, %v1062_v0  ;;  %v355_v62 = vsel %vm352_vm7, 0.0, %v351_v58  ;;  %vm666_vm8 = vmpackc.low %vm352_vm7, %vm352_vm7 }
 0x36e   :  { %v702_v63 = vpack.c.bf16 %v665_v61, %v662_v60  ;;  %886 = vmatmul.mubr.msk.bf16.vlgmr.msra.gmra.mxu0 %vm666_vm8, %v1065_v24  ;;  %v404_v17 = vmul.f32 %v1173_v11, %v355_v62 }
 0x36f   :  { %910 = vmatpush3.bf16.msra.mxu0 %v1105_v1  ;;  %925 = vmatprep.mubr.msk.bf16.mxu0 %vm1063_vm0, %v1062_v0 }
 0x370   :  { %714 = vst [vmem:[#allocation12 + $0x8] sm:$0xff] %v702_v63   ;;  %911 = vmatprep.subr.bf16.mxu0 %v1062_v0 }
 0x373   :  { %912 = vmatpush3.bf16.msra.mxu0 %v1108_v2 }
 0x374   :  { %913 = vmatprep.subr.bf16.mxu0 %v1062_v0 }
 0x377   :  { %914 = vmatpush3.bf16.msra.mxu0 %v1114_v3 }
 0x378   :  { %915 = vmatprep.subr.bf16.mxu0 %v1062_v0 }
 0x37b   :  { %916 = vmatpush3.bf16.msra.mxu0 %v1120_v4 }
 0x37c   :  { %917 = vmatprep.subr.bf16.mxu0 %v1062_v0 }
 0x37f   :  { %918 = vmatpush3.bf16.msra.mxu0 %v1126_v5 }
 0x380   :  { %919 = vmatprep.subr.bf16.mxu0 %v1062_v0 }
 0x383   :  { %920 = vmatpush3.bf16.msra.mxu0 %v1132_v6 }
 0x384   :  { %921 = vmatprep.subr.bf16.mxu0 %v1062_v0 }
 0x387   :  { %922 = vmatpush3.bf16.msra.mxu0 %v1138_v7 }
 0x388   :  { %923 = vmatprep.subr.bf16.mxu0 %v1062_v0 }
 0x38b   :  { %924 = vmatpush3.bf16.msra.mxu0 %v1144_v8 }
 0x42e   :  { %v393_v12 = vpop.f32.mrf.mxu0 }
 0x42f   :  { %v402_v14 = vadd.f32 %v401_v9, %v393_v12 }
 0x430   :  { %v887_v15 = vpop.f32.mrf.mxu0 }
 0x431   :  { %v403_v16 = vadd.f32 %v402_v14, %v399_v13 }
 0x432   :  { %v396_v18 = vpop.f32.mrf.mxu0 }
 0x433   :  { %v405_v19 = vadd.f32 %v404_v17, %v403_v16 }
 0x434   :  { %v888_v21 = vpop.f32.mrf.mxu0 }
 0x435   :  { %vm406_vm9 = vcmp.ge.f32.partialorder %v405_v19, %v1177_v20 }
 0x436   :  { %v409_v22 = vsel %vm406_vm9, 0.0, %v405_v19  ;;  %vm669_vm10 = vmpackc.low %vm406_vm9, %vm406_vm9 }
 0x437   :  { %906 = vmatmul.mubr.msk.bf16.vlgmr.msra.gmra.mxu1 %vm669_vm10, %v1065_v24 }
 0x438   :  { %930 = vmatpush3.bf16.msra.mxu1 %v1105_v1  ;;  %945 = vmatprep.mubr.msk.bf16.mxu1 %vm1063_vm0, %v1062_v0  ;;  %v455_v1 = vld [vmem:[#allocation6 + $0x28] sm:$0xff] }
 0x439   :  { %931 = vmatprep.subr.bf16.mxu1 %v1062_v0 }
 0x43c   :  { %932 = vmatpush3.bf16.msra.mxu1 %v1108_v2 }
 0x43d   :  { %933 = vmatprep.subr.bf16.mxu1 %v1062_v0 }
 0x440   :  { %934 = vmatpush3.bf16.msra.mxu1 %v1114_v3  ;;  %v453_v3 = vmul.f32 %v1171_v10, %v403_v16 }
 0x441   :  { %935 = vmatprep.subr.bf16.mxu1 %v1062_v0 }
 0x444   :  { %936 = vmatpush3.bf16.msra.mxu1 %v1120_v4 }
 0x445   :  { %937 = vmatprep.subr.bf16.mxu1 %v1062_v0 }
 0x448   :  { %938 = vmatpush3.bf16.msra.mxu1 %v1126_v5  ;;  %v458_v5 = vmul.f32 %v1173_v11, %v409_v22 }
 0x449   :  { %939 = vmatprep.subr.bf16.mxu1 %v1062_v0 }
 0x44c   :  { %940 = vmatpush3.bf16.msra.mxu1 %v1132_v6 }
 0x44d   :  { %941 = vmatprep.subr.bf16.mxu1 %v1062_v0 }
 0x450   :  { %942 = vmatpush3.bf16.msra.mxu1 %v1138_v7  ;;  %v668_v7 = vsel %vm406_vm9, 1.0, %v1062_v0 }
 0x451   :  { %943 = vmatprep.subr.bf16.mxu1 %v1062_v0 }
 0x454   :  { %944 = vmatpush3.bf16.msra.mxu1 %v1144_v8 }
 0x4f7   :  { %v447_v2 = vpop.f32.mrf.mxu1 }
 0x4f8   :  { %v456_v4 = vadd.f32 %v455_v1, %v447_v2 }
 0x4f9   :  { %v907_v23 = vpop.f32.mrf.mxu1 }
 0x4fa   :  { %v457_v25 = vadd.f32 %v456_v4, %v453_v3 }
 0x4fb   :  { %v450_v26 = vpop.f32.mrf.mxu1 }
 0x4fc   :  { %v459_v27 = vadd.f32 %v458_v5, %v457_v25  ;;  %v507_v32 = vmul.f32 %v1171_v10, %v457_v25 }
 0x4fd   :  { %v908_v6 = vpop.f32.mrf.mxu1 }
 0x4fe   :  { %vm460_vm11 = vcmp.ge.f32.partialorder %v459_v27, %v1177_v20 }
 0x4ff   :  { %v671_v8 = vsel %vm460_vm11, 1.0, %v1062_v0  ;;  %v463_v28 = vsel %vm460_vm11, 0.0, %v459_v27  ;;  %vm672_vm12 = vmpackc.low %vm460_vm11, %vm460_vm11 }
 0x500   :  { %v707_v29 = vpack.c.bf16 %v671_v8, %v668_v7  ;;  %926 = vmatmul.mubr.msk.bf16.vlgmr.msra.gmra.mxu0 %vm672_vm12, %v1065_v24  ;;  %v512_v36 = vmul.f32 %v1173_v11, %v463_v28 }
 0x502   :  { %715 = vst [vmem:[#allocation12 + $0x10] sm:$0xff] %v707_v29  }
 0x5c0   :  { %v501_v31 = vpop.f32.mrf.mxu0 }
 0x5c1   :  { %v510_v33 = vadd.f32 %v509_v30, %v501_v31 }
 0x5c2   :  { %v927_v34 = vpop.f32.mrf.mxu0 }
 0x5c3   :  { %v511_v35 = vadd.f32 %v510_v33, %v507_v32 }
 0x5c4   :  { %v504_v37 = vpop.f32.mrf.mxu0 }
 0x5c5   :  { %v513_v38 = vadd.f32 %v512_v36, %v511_v35  ;;  %v561_v43 = vmul.f32 %v1171_v10, %v511_v35 }
 0x5c6   :  { %v928_v39 = vpop.f32.mrf.mxu0 }
 0x5c7   :  { %vm514_vm13 = vcmp.ge.f32.partialorder %v513_v38, %v1177_v20 }
 0x5c8   :  { %v517_v40 = vsel %vm514_vm13, 0.0, %v513_v38  ;;  %vm675_vm14 = vmpackc.low %vm514_vm13, %vm514_vm13 }
 0x5c9   :  { %946 = vmatmul.mubr.msk.bf16.vlgmr.msra.gmra.mxu1 %vm675_vm14, %v1065_v24  ;;  %v566_v47 = vmul.f32 %v1173_v11, %v517_v40  ;;  %v674_v24 = vsel %vm514_vm13, 1.0, %v1062_v0 }
 0x689   :  { %v555_v42 = vpop.f32.mrf.mxu1 }
 0x68a   :  { %v564_v44 = vadd.f32 %v563_v41, %v555_v42 }
 0x68b   :  { %v947_v45 = vpop.f32.mrf.mxu1 }
 0x68c   :  { %v565_v46 = vadd.f32 %v564_v44, %v561_v43 }
 0x68d   :  { %v558_v48 = vpop.f32.mrf.mxu1 }
 0x68e   :  { %v567_v49 = vadd.f32 %v566_v47, %v565_v46 }
 0x68f   :  { %v948_v50 = vpop.f32.mrf.mxu1 }
 0x690   :  { %vm568_vm15 = vcmp.ge.f32.partialorder %v567_v49, %v1177_v20 }
 0x691   :  { %v677_v51 = vsel %vm568_vm15, 1.0, %v1062_v0 }
 0x692   :  { %v712_v52 = vpack.c.bf16 %v677_v51, %v674_v24 }
 0x694   :  { %716 = vst [vmem:[#allocation12 + $0x18] sm:$0xff] %v712_v52  }
 0x695   :  { %1040 = shalt.err (!%p1037_p5)
}
 0x696   :  { %638 = dma.vmem_to_hbm [thread:$0]  %s633_s2, 512, %s1341_s3, [#allocation8], %s1056_s15, %s1056_s15, %s1057_s16  }
 0x697   :  { %1053 = dma.done.wait [#allocation8], 512  }
 0x698   :  { %1054 = vsyncadd [#allocation8], 4294966784 }
 0x699   :  { %642 = vsyncpa [#allocation7], 1 }
 0x69a   :  { %643 = vsyncpa [#allocation10], 1 }
 0x69b   :  { %644 = vsyncpa [#allocation8], 1 }

</bundles_post_ra>
